<compile_context>
chip_gen: v6e
topology: v6e:2x2x1
jax: 0.10.0
libtpu: 0.0.40
codegen_flags: <defaults>
</compile_context>

<pallas_src>
import jax
import jax.numpy as jnp
from jax.experimental import pallas as pl
from jax.experimental.pallas import tpu as pltpu


def _vmem_capacity_bytes():
    try:
        cap = getattr(pltpu.get_tpu_info(), "vmem_capacity_bytes", None)
        if cap:
            return int(cap)
    except Exception:
        pass
    return 64 * 1024 * 1024  # conservative default (v7x per-TC VMEM)


def _choose_tile_s(S, C, logit_bytes, tgt_bytes):
    # VMEM budget ~35% of physical capacity: ~45 MiB on v5e/v6e, ~22 MiB on v7x.
    budget = max(8 * 1024 * 1024, int(_vmem_capacity_bytes() * 0.35))
    # Resident per-lane bytes: double-buffered logits + double-buffered targets.
    per_lane = 2 * C * logit_bytes + 2 * tgt_bytes
    tile = (budget // per_lane) // 128 * 128
    s_up = -(-S // 128) * 128          # never tile beyond the (rounded-up) extent
    return int(max(128, min(tile, 65536, s_up)))


def _make_dice_kernel(C, tile_s, tiles_per_group, S, ragged):
    def kernel(logits_ref, tgt_ref, inter_ref, union_ref):
        s = pl.program_id(2)

        @pl.when(s == 0)
        def _():
            inter_ref[...] = jnp.zeros_like(inter_ref)
            union_ref[...] = jnp.zeros_like(union_ref)

        x = logits_ref[0].astype(jnp.float32)            # (C, tile_s)
        t = tgt_ref[0].astype(jnp.int32)                 # (1, tile_s)

        valid = t != 255                                 # (1, tile_s) bool
        if ragged:                                       # static (trace-time) branch
            g = pl.program_id(1)
            lane = jax.lax.broadcasted_iota(jnp.int32, (1, tile_s), 1)
            in_range = (g * tiles_per_group + s) * tile_s + lane < S
            valid = valid & in_range
            # Out-of-range lanes of the last tile hold unspecified data; zero
            # the logits so a stray non-finite value cannot poison the softmax.
            x = jnp.where(in_range, x, 0.0)

        # Softmax over the channel (sublane) axis; exp runs on the EUP.
        x = x - jnp.max(x, axis=0, keepdims=True)
        e = jnp.exp(x)
        denom = jnp.sum(e, axis=0, keepdims=True)        # (1, tile_s)
        # Fold the valid mask into the per-lane reciprocal: probs are already
        # masked, so the sum(probs * mask) term needs no further select.
        inv = pl.reciprocal(denom, approx=False) * valid.astype(jnp.float32)
        probs = e * inv                                  # (C, tile_s), masked

        # one_hot(target) * mask without a float one-hot materialization:
        # invalid/ignored lanes compare against -1, which never matches a class.
        cls = jax.lax.broadcasted_iota(jnp.int32, (C, tile_s), 0)
        sel = cls == jnp.where(valid, t, -1)             # (C, tile_s) bool

        inter_el = jnp.where(sel, probs, 0.0)            # probs * one_hot * mask
        union_el = probs + sel.astype(jnp.float32)       # probs*mask + one_hot*mask

        # Per-step lane reductions (XLU) into the tiny resident output blocks;
        # no full-width accumulator read-modify-write.
        inter_ref[...] += jnp.sum(inter_el, axis=1, keepdims=True)[None, None]
        union_ref[...] += jnp.sum(union_el, axis=1, keepdims=True)[None, None]

    return kernel


def dice_loss(logits, targets, smooth=1.0, tile_s=None, spatial_groups=None):
    """logits: (N, C, H, W) float (f32 or bf16); targets: (N, H, W) int, 255 = ignore."""
    N, C, H, W = logits.shape
    S = H * W

    if not jnp.issubdtype(targets.dtype, jnp.integer):
        targets = targets.astype(jnp.int32)

    logit_bytes = jnp.dtype(logits.dtype).itemsize
    tgt_bytes = jnp.dtype(targets.dtype).itemsize

    if tile_s is None:
        tile_s = _choose_tile_s(S, C, logit_bytes, tgt_bytes)

    num_tiles = -(-S // tile_s)
    ragged = (num_tiles * tile_s) != S

    if spatial_groups is None:
        # v7x has 2 TensorCores; when the batch axis alone cannot feed both,
        # split the spatial tiles into 2 parallel groups.
        spatial_groups = 2 if (N == 1 and num_tiles >= 2) else 1
    G = max(1, min(spatial_groups, num_tiles))
    while num_tiles % G != 0:          # keep tiles/group uniform (no fully-OOB blocks)
        G -= 1
    tiles_per_group = num_tiles // G

    logits_r = logits.reshape(N, C, S)       # native dtype on the wire
    targets_r = targets.reshape(N, 1, S)     # native integer dtype on the wire

    kernel = _make_dice_kernel(C, tile_s, tiles_per_group, S, ragged)

    used = tile_s * (2 * C * logit_bytes + 2 * tgt_bytes)
    vmem_cap = _vmem_capacity_bytes()
    vmem_limit = int(min(0.9 * vmem_cap, max(2 * used, 32 * 1024 * 1024)))

    out_shape = tuple(jax.ShapeDtypeStruct((N, G, C, 1), jnp.float32) for _ in range(2))

    inter, union = pl.pallas_call(
        kernel,
        out_shape=out_shape,
        grid_spec=pltpu.PrefetchScalarGridSpec(
            num_scalar_prefetch=0,
            grid=(N, G, tiles_per_group),
            in_specs=[
                pl.BlockSpec((1, C, tile_s),
                             lambda n, g, s: (n, 0, g * tiles_per_group + s)),
                pl.BlockSpec((1, 1, tile_s),
                             lambda n, g, s: (n, 0, g * tiles_per_group + s)),
            ],
            out_specs=(
                pl.BlockSpec((1, 1, C, 1), lambda n, g, s: (n, g, 0, 0)),
                pl.BlockSpec((1, 1, C, 1), lambda n, g, s: (n, g, 0, 0)),
            ),
        ),
        compiler_params=pltpu.CompilerParams(
            # Batch and spatial-group axes are independent -> megacore-shardable.
            dimension_semantics=("parallel", "parallel", "arbitrary"),
            vmem_limit_bytes=vmem_limit,
        ),
    )(logits_r, targets_r)

    # Tiny epilogue in plain JAX.
    inter_c = jnp.sum(inter[..., 0], axis=(0, 1))        # (C,)
    union_c = jnp.sum(union[..., 0], axis=(0, 1))        # (C,)
    dice = (2.0 * inter_c + smooth) / (union_c + smooth)
    return 1.0 - jnp.mean(dice)


def _dice_loss_ref(logits, targets, smooth=1.0):
    """Plain-JAX reference mirroring the PyTorch module exactly."""
    num_classes = logits.shape[1]
    probs = jax.nn.softmax(logits, axis=1)
    valid = (targets != 255)
    mask = valid.astype(jnp.float32)
    t_safe = targets * valid.astype(targets.dtype)
    onehot = jax.nn.one_hot(t_safe, num_classes, dtype=jnp.float32)
    onehot = jnp.transpose(onehot, (0, 3, 1, 2))
    m = mask[:, None, :, :]
    intersection = jnp.sum(probs * onehot * m, axis=(0, 2, 3))
    union = jnp.sum(probs * m, axis=(0, 2, 3)) + jnp.sum(onehot * m, axis=(0, 2, 3))
    dice = (2.0 * intersection + smooth) / (union + smooth)
    return 1.0 - jnp.mean(dice)


if __name__ == "__main__":
    key = jax.random.PRNGKey(0)
    k1, k2, k3 = jax.random.split(key, 3)

    # Small shapes consistent with the module: N=2, C=4, H=W=16.
    N, C, H, W = 2, 4, 16, 16
    logits = jax.random.normal(k1, (N, C, H, W), dtype=jnp.float32)
    targets = jax.random.randint(k2, (N, H, W), 0, C, dtype=jnp.int32)
    ignore = jax.random.uniform(k3, (N, H, W)) < 0.1
    targets = jnp.where(ignore, jnp.int32(255), targets)

    loss = jax.block_until_ready(dice_loss(logits, targets, smooth=1.0))
    ref = _dice_loss_ref(logits, targets, smooth=1.0)
    assert jnp.allclose(loss, ref, atol=1e-5, rtol=1e-5), (loss, ref)

    # Ragged spatial extent (S = 225): exercised via in-kernel lane masking
    # (no host-side pad of the logits).
    H2, W2 = 15, 15
    logits2 = jax.random.normal(k1, (N, C, H2, W2), dtype=jnp.float32)
    targets2 = jax.random.randint(k2, (N, H2, W2), 0, C, dtype=jnp.int32)
    loss2 = jax.block_until_ready(dice_loss(logits2, targets2, smooth=1.0))
    ref2 = _dice_loss_ref(logits2, targets2, smooth=1.0)
    assert jnp.allclose(loss2, ref2, atol=1e-5, rtol=1e-5), (loss2, ref2)

    # Multi-tile accumulation path (2 spatial tiles, single group).
    loss3 = jax.block_until_ready(dice_loss(logits, targets, smooth=1.0, tile_s=128))
    assert jnp.allclose(loss3, ref, atol=1e-5, rtol=1e-5), (loss3, ref)

    # N = 1 with the spatial megacore split (2 parallel tile groups).
    H4, W4 = 32, 32
    logits4 = jax.random.normal(k1, (1, C, H4, W4), dtype=jnp.float32)
    targets4 = jax.random.randint(k2, (1, H4, W4), 0, C, dtype=jnp.int32)
    loss4 = jax.block_until_ready(dice_loss(logits4, targets4, smooth=1.0, tile_s=256))
    ref4 = _dice_loss_ref(logits4, targets4, smooth=1.0)
    assert jnp.allclose(loss4, ref4, atol=1e-5, rtol=1e-5), (loss4, ref4)

    print("KERNEL_OK")
</pallas_src>

<mosaic_0001>
module attributes {stable_mosaic.version = 11 : i64} {
  func.func @kernel(%arg0: i32, %arg1: i32, %arg2: i32, %arg3: memref<1x4x256xf32, #tpu.memory_space<vmem>>, %arg4: memref<1x1x256xi32, #tpu.memory_space<vmem>>, %arg5: memref<1x1x4x1xf32, #tpu.memory_space<vmem>>, %arg6: memref<1x1x4x1xf32, #tpu.memory_space<vmem>>) attributes {dimension_semantics = [#tpu.dimension_semantics<parallel>, #tpu.dimension_semantics<parallel>, #tpu.dimension_semantics<arbitrary>], iteration_bounds = array<i64: 2, 1, 1>, scalar_prefetch = 0 : i64, scratch_operands = 0 : i64, tpu.core_type = #tpu.core_type<tc>, window_params = [{transform_indices = @transform_0, window_bounds = array<i64: 1, 4, 256>}, {transform_indices = @transform_1, window_bounds = array<i64: 1, 1, 256>}, {transform_indices = @transform_2, window_bounds = array<i64: 1, 1, 4, 1>}, {transform_indices = @transform_3, window_bounds = array<i64: 1, 1, 4, 1>}]} {
    %c0_i32 = arith.constant 0 : i32
    %0 = arith.cmpi eq, %arg2, %c0_i32 : i32
    %1 = arith.extui %0 : i1 to i32
    %c0_i32_0 = arith.constant 0 : i32
    %2 = arith.cmpi ne, %1, %c0_i32_0 : i32
    scf.if %2 {
      %cst_26 = arith.constant 0.000000e+00 : f32
      %44 = vector.broadcast %cst_26 : f32 to vector<1x1x4x1xf32>
      %c0_27 = arith.constant 0 : index
      %c0_28 = arith.constant 0 : index
      %c0_29 = arith.constant 0 : index
      %c0_30 = arith.constant 0 : index
      %45 = vector.load %arg5[%c0_27, %c0_28, %c0_29, %c0_30] : memref<1x1x4x1xf32, #tpu.memory_space<vmem>>, vector<1x1x4x1xf32>
      tpu.vector_store %arg5[%c0_27, %c0_28, %c0_29, %c0_30], %44 {strides = array<i32>} : memref<1x1x4x1xf32, #tpu.memory_space<vmem>>, vector<1x1x4x1xf32>,
      %cst_31 = arith.constant 0.000000e+00 : f32
      %46 = vector.broadcast %cst_31 : f32 to vector<1x1x4x1xf32>
      %c0_32 = arith.constant 0 : index
      %c0_33 = arith.constant 0 : index
      %c0_34 = arith.constant 0 : index
      %c0_35 = arith.constant 0 : index
      %47 = vector.load %arg6[%c0_32, %c0_33, %c0_34, %c0_35] : memref<1x1x4x1xf32, #tpu.memory_space<vmem>>, vector<1x1x4x1xf32>
      tpu.vector_store %arg6[%c0_32, %c0_33, %c0_34, %c0_35], %46 {strides = array<i32>} : memref<1x1x4x1xf32, #tpu.memory_space<vmem>>, vector<1x1x4x1xf32>,
    } else {
    }
    %c0 = arith.constant 0 : index
    %c0_1 = arith.constant 0 : index
    %c0_2 = arith.constant 0 : index
    %3 = vector.load %arg3[%c0, %c0_1, %c0_2] : memref<1x4x256xf32, #tpu.memory_space<vmem>>, vector<1x4x256xf32>
    %4 = vector.shape_cast %3 : vector<1x4x256xf32> to vector<4x256xf32>
    %c0_3 = arith.constant 0 : index
    %c0_4 = arith.constant 0 : index
    %c0_5 = arith.constant 0 : index
    %5 = vector.load %arg4[%c0_3, %c0_4, %c0_5] : memref<1x1x256xi32, #tpu.memory_space<vmem>>, vector<1x1x256xi32>
    %6 = vector.shape_cast %5 : vector<1x1x256xi32> to vector<1x256xi32>
    %c255_i32 = arith.constant 255 : i32
    %7 = vector.broadcast %c255_i32 : i32 to vector<1x256xi32>
    %8 = arith.cmpi ne, %6, %7 : vector<1x256xi32>
    %cst = arith.constant dense<0xFF800000> : vector<256xf32>
    %9 = vector.multi_reduction <maximumf>, %4, %cst [0] : vector<4x256xf32> to vector<256xf32>
    %10 = vector.shape_cast %9 : vector<256xf32> to vector<1x256xf32>
    %11 = vector.broadcast %10 : vector<1x256xf32> to vector<4x256xf32>
    %12 = arith.subf %4, %11 : vector<4x256xf32>
    %13 = math.exp %12 : vector<4x256xf32>
    %cst_6 = arith.constant dense<0.000000e+00> : vector<256xf32>
    %14 = vector.multi_reduction <add>, %13, %cst_6 [0] : vector<4x256xf32> to vector<256xf32>
    %15 = vector.shape_cast %14 : vector<256xf32> to vector<1x256xf32>
    %16 = tpu.reciprocal %15 : vector<1x256xf32> -> vector<1x256xf32>
    %17 = arith.extui %8 : vector<1x256xi1> to vector<1x256xi32>
    %18 = arith.sitofp %17 : vector<1x256xi32> to vector<1x256xf32>
    %19 = arith.mulf %16, %18 : vector<1x256xf32>
    %20 = vector.broadcast %19 : vector<1x256xf32> to vector<4x256xf32>
    %21 = arith.mulf %13, %20 : vector<4x256xf32>
    %22 = tpu.iota {dimensions = array<i32: 0>} : vector<4x256xi32>
    %c-1_i32 = arith.constant -1 : i32
    %23 = vector.broadcast %c-1_i32 : i32 to vector<1x256xi32>
    %24 = arith.select %8, %6, %23 : vector<1x256xi1>, vector<1x256xi32>
    %25 = vector.broadcast %24 : vector<1x256xi32> to vector<4x256xi32>
    %26 = arith.cmpi eq, %22, %25 : vector<4x256xi32>
    %cst_7 = arith.constant 0.000000e+00 : f32
    %27 = vector.broadcast %cst_7 : f32 to vector<4x256xf32>
    %28 = arith.select %26, %21, %27 : vector<4x256xi1>, vector<4x256xf32>
    %29 = arith.extui %26 : vector<4x256xi1> to vector<4x256xi32>
    %30 = arith.sitofp %29 : vector<4x256xi32> to vector<4x256xf32>
    %31 = arith.addf %21, %30 : vector<4x256xf32>
    %c0_8 = arith.constant 0 : index
    %c0_9 = arith.constant 0 : index
    %c0_10 = arith.constant 0 : index
    %c0_11 = arith.constant 0 : index
    %32 = vector.load %arg5[%c0_8, %c0_9, %c0_10, %c0_11] : memref<1x1x4x1xf32, #tpu.memory_space<vmem>>, vector<1x1x4x1xf32>
    %cst_12 = arith.constant dense<0.000000e+00> : vector<4xf32>
    %33 = vector.multi_reduction <add>, %28, %cst_12 [1] : vector<4x256xf32> to vector<4xf32>
    %34 = vector.shape_cast %33 : vector<4xf32> to vector<4x1xf32>
    %35 = vector.shape_cast %34 : vector<4x1xf32> to vector<1x1x4x1xf32>
    %36 = arith.addf %32, %35 : vector<1x1x4x1xf32>
    %c0_13 = arith.constant 0 : index
    %c0_14 = arith.constant 0 : index
    %c0_15 = arith.constant 0 : index
    %c0_16 = arith.constant 0 : index
    %37 = vector.load %arg5[%c0_13, %c0_14, %c0_15, %c0_16] : memref<1x1x4x1xf32, #tpu.memory_space<vmem>>, vector<1x1x4x1xf32>
    tpu.vector_store %arg5[%c0_13, %c0_14, %c0_15, %c0_16], %36 {strides = array<i32>} : memref<1x1x4x1xf32, #tpu.memory_space<vmem>>, vector<1x1x4x1xf32>,
    %c0_17 = arith.constant 0 : index
    %c0_18 = arith.constant 0 : index
    %c0_19 = arith.constant 0 : index
    %c0_20 = arith.constant 0 : index
    %38 = vector.load %arg6[%c0_17, %c0_18, %c0_19, %c0_20] : memref<1x1x4x1xf32, #tpu.memory_space<vmem>>, vector<1x1x4x1xf32>
    %cst_21 = arith.constant dense<0.000000e+00> : vector<4xf32>
    %39 = vector.multi_reduction <add>, %31, %cst_21 [1] : vector<4x256xf32> to vector<4xf32>
    %40 = vector.shape_cast %39 : vector<4xf32> to vector<4x1xf32>
    %41 = vector.shape_cast %40 : vector<4x1xf32> to vector<1x1x4x1xf32>
    %42 = arith.addf %38, %41 : vector<1x1x4x1xf32>
    %c0_22 = arith.constant 0 : index
    %c0_23 = arith.constant 0 : index
    %c0_24 = arith.constant 0 : index
    %c0_25 = arith.constant 0 : index
    %43 = vector.load %arg6[%c0_22, %c0_23, %c0_24, %c0_25] : memref<1x1x4x1xf32, #tpu.memory_space<vmem>>, vector<1x1x4x1xf32>
    tpu.vector_store %arg6[%c0_22, %c0_23, %c0_24, %c0_25], %42 {strides = array<i32>} : memref<1x1x4x1xf32, #tpu.memory_space<vmem>>, vector<1x1x4x1xf32>,
    return
  }
  func.func @transform_0(%arg0: i32, %arg1: i32, %arg2: i32) -> (i32, i32, i32) {
    %c1_i32 = arith.constant 1 : i32
    %0 = arith.muli %arg1, %c1_i32 : i32
    %1 = arith.addi %0, %arg2 : i32
    %c0_i32 = arith.constant 0 : i32
    %c0_i32_0 = arith.constant 0 : i32
    return %arg0, %c0_i32, %1 : i32, i32, i32
  }
  func.func @transform_1(%arg0: i32, %arg1: i32, %arg2: i32) -> (i32, i32, i32) {
    %c1_i32 = arith.constant 1 : i32
    %0 = arith.muli %arg1, %c1_i32 : i32
    %1 = arith.addi %0, %arg2 : i32
    %c0_i32 = arith.constant 0 : i32
    %c0_i32_0 = arith.constant 0 : i32
    return %arg0, %c0_i32, %1 : i32, i32, i32
  }
  func.func @transform_2(%arg0: i32, %arg1: i32, %arg2: i32) -> (i32, i32, i32, i32) {
    %c0_i32 = arith.constant 0 : i32
    %c0_i32_0 = arith.constant 0 : i32
    %c0_i32_1 = arith.constant 0 : i32
    return %arg0, %arg1, %c0_i32, %c0_i32_0 : i32, i32, i32, i32
  }
  func.func @transform_3(%arg0: i32, %arg1: i32, %arg2: i32) -> (i32, i32, i32, i32) {
    %c0_i32 = arith.constant 0 : i32
    %c0_i32_0 = arith.constant 0 : i32
    %c0_i32_1 = arith.constant 0 : i32
    return %arg0, %arg1, %c0_i32, %c0_i32_0 : i32, i32, i32, i32
  }
}

</mosaic_0001>

<bundles_post_ra>
// kernel: tpu_custom_call.1
= control target key start
LH: loop header
LB: loop body
LE: loop exit
PB: predicated region body
PF: predicated region fallthrough
CT: control target
= control target key end

     0   :  { %9 = vsyncpa [#allocation3], 0  ;;  %s964_s0 = inlined_call_operand.hbm [shape: f32[2,4,256], index: 0, kind: input, shape index: {}]   ;;  %s965_s1 = inlined_call_operand.hbm [shape: s32[2,1,256], index: 1, kind: input, shape index: {}]   ;;  %s966_s2 = inlined_call_operand.vmem [shape: f32[2,1,4,1], index: 2, kind: output, shape index: {0}]   ;;  %s967_s3 = inlined_call_operand.vmem [shape: f32[2,1,4,1], index: 3, kind: output, shape index: {1}]  }
   0x1   :  { %11 = vsyncpa [#allocation3 + $0x1], 0 }
   0x2   :  { %12 = vsyncpa [#allocation5], 0 }
   0x3   :  { %14 = vsyncpa [#allocation5 + $0x1], 0  ;;  %s801_s12 = smov 0   ;;  %s803_s13 = smov 0  }
   0x4   :  { %s805_s14 = smov 0   ;;  %s807_s15 = smov 0  }
   0x5   :  { %s809_s16 = smov 0   ;;  %s811_s17 = smov 0  }
   0x6 LB: > { %s576_s18 = sadd.s32 4294967295, %s776_s17   ;;  %s39_s19 = sadd.s32 1, %s772_s16  ;;  %s776_s17 = sphi %s811_s17, %s20_s17   ;;  %s772_s16 = sphi %s809_s16, %s976_s16   ;;  %s768_s15 = sphi %s807_s15, %s975_s15   ;;  %s764_s14 = sphi %s805_s14, %s974_s14   ;;  %s760_s13 = sphi %s803_s13, %s973_s13   ;;  %s756_s12 = sphi %s801_s12, %s972_s12  }
   0x7   : > { %p41_p0 = scmp.ge.s32.totalorder %s39_s19, 2  ;;  %s50_s20 = sadd.s32 1, %s764_s14 }
   0x8   : > { %p57_p1 = scmp.ne.s32.totalorder %s764_s14, %s760_s13  ;;  %p58_p2 = scmp.eq.s32.totalorder %s776_s17, 0 }
   0x9   : > { %s978_s19 = smov (%p41_p0, %s39_s19), 0  ;;  %p63_p4 = scmp.ne.s32.totalorder %s760_s13, %s756_s12 }
   0xa   : > { %p837_p3 = por %p58_p2, %p57_p1  ;;  %s45_s22 = ssub.s32 %s772_s16, %s978_s19 }
   0xb   : > { %p64_p5 = scmp.eq.s32.totalorder %s576_s18, 0  ;;  %p48_p6 = scmp.eq.s32.totalorder %s45_s22, 0 }
   0xc   : > { %p609_p8 = scmp.lt.s32.totalorder %s776_s17, 2  ;;  %s853_s25 = sand.u32 1, %s764_s14  }
   0xd   : > { %p844_p7 = por %p64_p5, %p63_p4  ;;  %s596_s26 = sshll.u32 %s772_s16, 7 }
   0xe   : > { %s850_s24 = scalar_select %p48_p6, %s764_s14, %s50_s20  }
   0xf   : > { %s580_s27 = sshll.u32 %s853_s25, 3  ;;  %s186_s30 = scalar_lea.hbm %s964_s0, %s596_s26 }
  0x10   : > { %s177_s4 = scalar_lea.vmem [#allocation2], %s580_s27  ;;  %p862_p9 = pnand %p609_p8, %p837_p3 }
  0x11   : > { %s188_s5 = sshll.u32 %s177_s4, 4  ;;  %p586_p10 = scmp.ge.s32.totalorder %s776_s17, 1  ;;  %s189_s5 = int_to_ptr.vmem [resolvable:$true] %s188_s5 }
  0x12   : > { %p215_p11 = scmp.lt.s32.totalorder %s776_s17, 3  ;;  %s174_s7 = scalar_lea.sflag [#allocation3], %s853_s25 }
  0x13   : > { %p668_p12 = pneg %p862_p9  ;;  %s679_s8 = scalar_lea.vmem %s189_s5, 128 }
  0x14   : > { %p680_p13 = scmp.ne.s32.totalorder %s189_s5, %s679_s8  ;;  %s778_s9 = smov [#allocation2]  }
  0x15   : > { %s684_s10 = sshll.u32 %s778_s9, 4  ;;  %s685_s10 = int_to_ptr.vmem [resolvable:$false] %s684_s10 }
  0x16   : > { %p682_p0 = pnand %p680_p13, %p668_p12  ;;  %s686_s11 = scalar_lea.vmem %s685_s10, 256 }
  0x17   : > { %p687_p2 = scmp.lt.s32.totalorder %s189_s5, %s685_s10  ;;  %p688_p3 = scmp.lt.s32.totalorder %s686_s11, %s679_s8 }
  0x18   : > { %p683_p1 = pneg %p682_p0 }
  0x19   : > { %p689_p4 = por %p688_p3, %p687_p2 }
  0x1b   : > { %p690_p5 = pnand %p689_p4, %p683_p1 }
  0x1d   : > { %693 = shalt.err (!%p690_p5)
}
  0x1e   : > { %605 = dma.hbm_to_vmem [thread:$0]  (!%p862_p9), %s186_s30, 128, %s189_s5, %s174_s7  }
  0x1f   : > { %p880_p6 = pnand %p586_p10, %p215_p11  ;;  %s583_s18 = sshll.u32 %s853_s25, 1 }
  0x20   : > { %s597_s20 = sshll.u32 %s772_s16, 5  ;;  %s199_s27 = scalar_lea.vmem [#allocation4], %s583_s18 }
  0x21   : > { %s208_s26 = scalar_lea.hbm %s965_s1, %s597_s20  ;;  %s210_s28 = sshll.u32 %s199_s27, 4  ;;  %s211_s28 = int_to_ptr.vmem [resolvable:$true] %s210_s28 }
  0x22   : > { %s196_s29 = scalar_lea.sflag [#allocation5], %s853_s25  ;;  %s707_s4 = scalar_lea.vmem %s211_s28, 32 }
  0x23   : > { %p708_p8 = scmp.ne.s32.totalorder %s211_s28, %s707_s4  ;;  %s779_s30 = smov [#allocation4]  }
  0x24   : > { %s712_s5 = sshll.u32 %s779_s30, 4  ;;  %s713_s5 = int_to_ptr.vmem [resolvable:$false] %s712_s5 }
  0x25   : > { %p710_p13 = pnand %p708_p8, %p668_p12  ;;  %s714_s7 = scalar_lea.vmem %s713_s5, 64 }
  0x26   : > { %p715_p10 = scmp.lt.s32.totalorder %s211_s28, %s713_s5  ;;  %p716_p11 = scmp.lt.s32.totalorder %s714_s7, %s707_s4 }
  0x27   : > { %p711_p0 = pneg %p710_p13 }
  0x28   : > { %p717_p1 = por %p716_p11, %p715_p10 }
  0x2a   : > { %p718_p2 = pnand %p717_p1, %p711_p0 }
  0x2c   : > { %721 = shalt.err (!%p718_p2)
}
  0x2d   : > { %608 = dma.hbm_to_vmem [thread:$0]  (!%p862_p9), %s208_s26, 32, %s211_s28, %s196_s29  }
  0x2e   : > { %219 = sbr.rel (%p880_p6) target bundleno = 279 (0x117), region = 28  ;;  %s221_s25 = sand.u32 (!%p880_p6), 1, %s760_s13  }
  0x2f   : > { %s587_s8 = sshll.u32 (!%p880_p6), %s221_s25, 3  ;;  %s222_s9 = scalar_lea.sflag (!%p880_p6), [#allocation3], %s221_s25 }
  0x30   : > { %s225_s10 = scalar_lea.vmem (!%p880_p6), [#allocation2], %s587_s8 }
  0x33   : > { %747 = dma.done.wait (%p844_p7), %s222_s9, 128  }
  0x34   : > { %749 = vsyncadd (%p844_p7), %s222_s9, 4294967168  ;;  %s588_s11 = sshll.u32 %s221_s25, 1  ;;  %s231_s18 = scalar_lea.sflag [#allocation5], %s221_s25 }
  0x35   : > { %s902_s20 = scalar_lea.vmem [#allocation4], %s588_s11 }
  0x36   : > { %751 = dma.done.wait (%p844_p7), %s231_s18, 32  }
  0x37   : > { %753 = vsyncadd (%p844_p7), %s231_s18, 4294967264  ;;  %p275_p9 = scmp.lt.s32.totalorder %s768_s15, 1  ;;  %vm293_vm0 = vcmask 3072   ;;  %vm302_vm1 = vcmask 1043456   ;;  %v780_v0 = vmov 0.0   ;;  %v296_v1 = vld [vmem:[%s225_s10] sm:$0xff]  ;;  %v346_v35 = vlaneseq }
  0x38   : > { %v300_v2 = vcombine.high %v296_v1, %v296_v1  ;;  %v303_v3 = vsel %vm302_vm1, %v296_v1, -inf  ;;  %v297_v37 = vld [vmem:[%s902_s20] sm:$0x3] }
  0x39   : > { %s980_s15 = smov (!%p275_p9, %s768_s15), 1  ;;  %v304_v4 = vrot.slane %v303_v3, 4  ;;  %v347_v38 = vshrl.u32 %v346_v35, 7  ;;  %vm298_vm2 = vcmp.ne.s32.totalorder %v297_v37, 255 }
  0x3a   : > { %s589_s6 = sshll.u32 %s980_s15, 2  ;;  %v310_v5 = vsel %vm302_vm1, %v300_v2, -inf  ;;  %v591_v40 = vsel %vm298_vm2, 1.0, %v780_v0  ;;  %v373_v41 = vsel %vm298_vm2, %v297_v37, 4294967295 }
  0x3b   : > { %s918_s22 = scalar_lea.vmem %s966_s2, %s589_s6  ;;  %v305_v6 = vmax.f32 %v303_v3, %v304_v4  ;;  %v311_v7 = vrot.slane %v310_v5, 4  ;;  %v348_v39 = vsub.s32 0, %v347_v38  ;;  %v352_v42 = vsub.s32 1, %v347_v38  ;;  %s288_s27 = scalar_lea.vmem %s967_s3, %s589_s6 }
  0x3c   : > { %294 = vst.msk [vmem:[%s918_s22] sm:$0xf] %vm293_vm0, %v780_v0  ;;  %295 = vst.msk [vmem:[%s288_s27] sm:$0xf] %vm293_vm0, %v780_v0 }
  0x3d   : > { %v306_v8 = vrot.slane %v305_v6, 2  ;;  %v312_v9 = vmax.f32 %v310_v5, %v311_v7  ;;  %v349_v43 = vrot.slane %v591_v40, %v348_v39  ;;  %v377_v44 = vrot.slane %v373_v41, %v348_v39 }
  0x3e   : > { %v381_v45 = vrot.slane %v373_v41, %v352_v42  ;;  %v353_v46 = vrot.slane %v591_v40, %v352_v42 }
  0x3f   : > { %v307_v10 = vmax.f32 %v305_v6, %v306_v8  ;;  %v313_v11 = vrot.slane %v312_v9, 2  ;;  %vm382_vm3 = vcmp.eq.s32.totalorder %v347_v38, %v377_v44 }
  0x40   : > { %vm383_vm4 = vcmp.eq.s32.totalorder %v347_v38, %v381_v45  ;;  %v592_v52 = vsel %vm382_vm3, 1.0, %v780_v0 }
  0x41   : > { %v308_v12 = vrot.slane %v307_v10, 1  ;;  %v314_v13 = vmax.f32 %v312_v9, %v313_v11  ;;  %v593_v53 = vsel %vm383_vm4, 1.0, %v780_v0 }
  0x42   : > { %v395_v56 = vcombine.low %v592_v52, %v593_v53 }
  0x43   : > { %v309_v14 = vmax.f32 %v307_v10, %v308_v12  ;;  %v315_v15 = vrot.slane %v314_v13, 1  ;;  %v398_v6 = vld [vmem:[%s918_s22] sm:$0xf] }
  0x44   : > { %v407_v9 = vld [vmem:[%s288_s27] sm:$0xf] }
  0x45   : > { %v316_v16 = vmax.f32 %v314_v13, %v315_v15 }
  0x47   : > { %v319_v17 = vcombine.low %v309_v14, %v316_v16 }
  0x49   : > { %v321_v18 = vsub.f32 %v296_v1, %v319_v17 }
  0x4b   : > { %v322_v19 = vmul.f32 1.442695, %v321_v18 }
  0x4d   : > { %660 = vpow2.f32 %v322_v19 }
  0x5a   : > { %v661_v20 = vpop.eup %660 }
  0x5b   : > { %v325_v21 = vcombine.high %v661_v20, %v661_v20  ;;  %v327_v22 = vsel %vm302_vm1, %v661_v20, 0.0 }
  0x5c   : > { %v328_v23 = vrot.slane %v327_v22, 4 }
  0x5d   : > { %v334_v24 = vsel %vm302_vm1, %v325_v21, 0.0 }
  0x5e   : > { %v329_v25 = vadd.f32 %v328_v23, %v327_v22  ;;  %v335_v26 = vrot.slane %v334_v24, 4 }
  0x60   : > { %v330_v27 = vrot.slane %v329_v25, 2  ;;  %v336_v28 = vadd.f32 %v335_v26, %v334_v24 }
  0x62   : > { %v331_v29 = vadd.f32 %v330_v27, %v329_v25  ;;  %v337_v30 = vrot.slane %v336_v28, 2 }
  0x64   : > { %v332_v31 = vrot.slane %v331_v29, 1  ;;  %v338_v32 = vadd.f32 %v337_v30, %v336_v28 }
  0x66   : > { %v333_v33 = vadd.f32 %v332_v31, %v331_v29  ;;  %v339_v34 = vrot.slane %v338_v32, 1 }
  0x68   : > { %v340_v36 = vadd.f32 %v339_v34, %v338_v32  ;;  %662 = vrcp.f32 %v333_v33 }
  0x6a   : > { %664 = vrcp.f32 %v340_v36 }
  0x75   : > { %v663_v47 = vpop.eup %662 }
  0x76   : > { %v356_v48 = vmul.f32 %v663_v47, %v349_v43 }
  0x77   : > { %v665_v49 = vpop.eup %664 }
  0x78   : > { %v357_v50 = vmul.f32 %v665_v49, %v353_v46  ;;  %v361_v51 = vrot.slane %v356_v48, %v348_v39 }
  0x7a   : > { %v365_v54 = vrot.slane %v357_v50, %v348_v39 }
  0x7c   : > { %v368_v55 = vcombine.low %v361_v51, %v365_v54 }
  0x7e   : > { %v370_v57 = vmul.f32 %v661_v20, %v368_v55 }
  0x80   : > { %v385_v58 = vcombine.high %v370_v57, %v370_v57  ;;  %v387_v59 = vsel %vm382_vm3, %v370_v57, 0.0  ;;  %v397_v60 = vadd.f32 %v395_v56, %v370_v57 }
  0x81   : > { %v399_v61 = vsel %vm302_vm1, %v387_v59, 0.0 }
  0x82   : > { %v388_v62 = vsel %vm383_vm4, %v385_v58, 0.0  ;;  %v409_v63 = vcombine.high %v397_v60, %v397_v60  ;;  %v411_v2 = vsel %vm302_vm1, %v397_v60, 0.0 }
  0x83   : > { %v400_v1 = vsel %vm302_vm1, %v388_v62, 0.0 }
  0x84   : > { %v401_v3 = vadd.f32 %v400_v1, %v399_v61  ;;  %v412_v4 = vsel %vm302_vm1, %v409_v63, 0.0 }
  0x85   : > { %v413_v5 = vadd.f32 %v412_v4, %v411_v2 }
  0x86   : > { %402 = vadd.xlane.f32.xlu0 %v401_v3 }
  0x8a   : > { %414 = vadd.xlane.f32.xlu0 %v413_v5 }
 0x10f   : > { %v403_v7 = vpop.xlane.xlu0 %402 }
 0x110   : > { %v404_v8 = vadd.f32 %v403_v7, %v398_v6 }
 0x112   : > { %406 = vst.msk [vmem:[%s918_s22] sm:$0xf] %vm293_vm0, %v404_v8 }
 0x113   : > { %v415_v10 = vpop.xlane.xlu0 %414 }
 0x114   : > { %v416_v11 = vadd.f32 %v415_v10, %v407_v9 }
 0x116   : > { %417 = vst.msk [vmem:[%s288_s27] sm:$0xf] %vm293_vm0, %v416_v11 }
 0x117 PF: > { %s20_s17 = sadd.s32 1, %s776_s17   ;;  %s972_s12 = smov %s760_s13 }
 0x118   : > { %p17_p7 = scmp.ge.s32.totalorder %s20_s17, 4   ;;  %s973_s13 = smov %s764_s14 }
 0x119   : > { %s974_s14 = smov %s850_s24  ;;  %s975_s15 = smov %s772_s16 }
 0x11a   : > { %s976_s16 = smov %s978_s19  ;;  %19 = sbr.rel (!%p17_p7) target bundleno = 6 (0x6), region = 97 }
 0x11f   :  { %463 = vsyncpa [#allocation3], 1 }
 0x120   :  { %465 = vsyncpa [#allocation3 + $0x1], 1 }
 0x121   :  { %466 = vsyncpa [#allocation5], 1 }
 0x122   :  { %468 = vsyncpa [#allocation5 + $0x1], 1 }

</bundles_post_ra>
